<compile_context>
chip_gen: v7x
topology: tpu7x:2x2x1
jax: 0.10.0
libtpu: 0.0.40
codegen_flags: <defaults>
</compile_context>

<pallas_src>
import functools

import jax
import jax.numpy as jnp
from jax.experimental import pallas as pl
from jax.experimental.pallas import tpu as pltpu


# --------------------------------- math helpers ---------------------------------

def _gelu_tanh(x):
    # "gelu_pytorch_tanh" activation used by SigLIP (f32 math).
    c = jnp.float32(0.7978845608028654)  # sqrt(2/pi)
    return 0.5 * x * (1.0 + jnp.tanh(c * (x + 0.044715 * x * x * x)))


def _layer_norm(x, w, b, eps):
    mu = jnp.mean(x, axis=-1, keepdims=True)
    var = jnp.mean((x - mu) ** 2, axis=-1, keepdims=True)
    return (x - mu) * jax.lax.rsqrt(var + eps) * w + b


def _round_up(x, m):
    return ((x + m - 1) // m) * m


# ------------------------ kernel A: LN1 + fused K/V projection --------------------

def kv_proj_kernel(x_ref, ln1w_ref, ln1b_ref, wkv_ref, bkv_ref, kv_ref, *, eps):
    x = x_ref[0].astype(jnp.float32)                          # (ts, D) residual stream
    h = _layer_norm(x, ln1w_ref[0].astype(jnp.float32),
                    ln1b_ref[0].astype(jnp.float32), eps)
    y = jnp.dot(h.astype(jnp.bfloat16), wkv_ref[...],
                preferred_element_type=jnp.float32)           # one (D, 2D) MXU contraction
    y = y + bkv_ref[0].astype(jnp.float32)
    kv_ref[0] = y.astype(jnp.bfloat16)                        # lane-dense (ts, 2D) store


# ------------- kernel B: LN1 + Q proj + batched attention + out-proj + res --------

def attention_kernel(x_ref, ln1w_ref, ln1b_ref, wq_ref, bq_ref, kv_ref,
                     wo_ref, bo_ref, out_ref, *, num_heads, head_dim, seq_len, eps):
    D = num_heads * head_dim
    x = x_ref[0].astype(jnp.float32)                          # (tq, D)
    h = _layer_norm(x, ln1w_ref[0].astype(jnp.float32),
                    ln1b_ref[0].astype(jnp.float32), eps)
    # wq / bq are pre-scaled by head_dim**-0.5 outside the layer loop.
    q = jnp.dot(h.astype(jnp.bfloat16), wq_ref[...],
                preferred_element_type=jnp.float32) + bq_ref[0].astype(jnp.float32)
    tq = q.shape[0]

    # Head split happens in-kernel, in bf16 (HBM layouts stay lane-dense).
    qh = jnp.transpose(q.astype(jnp.bfloat16).reshape(tq, num_heads, head_dim),
                       (1, 0, 2))                             # (H, tq, hd)
    kv = kv_ref[0]                                            # (S_pad, 2D) bf16
    s_pad = kv.shape[0]
    kh = jnp.transpose(kv[:, :D].reshape(s_pad, num_heads, head_dim), (1, 0, 2))
    vh = jnp.transpose(kv[:, D:].reshape(s_pad, num_heads, head_dim), (1, 0, 2))

    # All heads batched in one dot_general; contracts last dims directly.
    scores = jnp.einsum("hqd,hkd->hqk", qh, kh,
                        preferred_element_type=jnp.float32)   # (H, tq, S_pad) f32
    if s_pad != seq_len:                                      # mask padded keys
        kidx = jax.lax.broadcasted_iota(jnp.int32, (1, 1, s_pad), 2)
        scores = jnp.where(kidx < seq_len, scores, jnp.float32(-1e30))
    m = jnp.max(scores, axis=-1, keepdims=True)
    p = jnp.exp(scores - m)
    denom = jnp.sum(p, axis=-1, keepdims=True)
    p = (p * pl.reciprocal(denom, approx=True)).astype(jnp.bfloat16)
    # attention_dropout_rate = 0.0 -> identity (no dropout applied)

    ctx = jnp.einsum("hqk,hkd->hqd", p, vh,
                     preferred_element_type=jnp.float32)      # (H, tq, hd) f32
    # Relayout after the bf16 cast (halves relayout bytes vs f32).
    ctx = jnp.transpose(ctx.astype(jnp.bfloat16), (1, 0, 2)).reshape(tq, D)

    attn = jnp.dot(ctx, wo_ref[...], preferred_element_type=jnp.float32)
    attn = attn + bo_ref[0].astype(jnp.float32)
    out_ref[0] = (x + attn).astype(out_ref.dtype)


# -------------------- kernel C: LN2 + MLP (I-chunked) + residual -------------------

def mlp_kernel(x_ref, ln2w_ref, ln2b_ref,
               wfc1_ref, bfc1_ref, wfc2_ref, bfc2_ref,
               out_ref, h2_scr, acc_scr, *, eps):
    ci = pl.program_id(1)

    @pl.when(ci == 0)
    def _():
        x = x_ref[0].astype(jnp.float32)
        h2 = _layer_norm(x, ln2w_ref[0].astype(jnp.float32),
                         ln2b_ref[0].astype(jnp.float32), eps)
        h2_scr[...] = h2.astype(jnp.bfloat16)
        acc_scr[...] = jnp.zeros_like(acc_scr)

    # fc1 chunk -> gelu -> partial fc2, accumulated into an f32 VMEM scratch.
    # TODO(synk): the gelu polynomial could run in bf16 on v6e/v7x (bf16 VPU).
    f = jnp.dot(h2_scr[...], wfc1_ref[...], preferred_element_type=jnp.float32)
    f = f + bfc1_ref[0].astype(jnp.float32)
    g = _gelu_tanh(f).astype(jnp.bfloat16)
    acc_scr[...] += jnp.dot(g, wfc2_ref[...], preferred_element_type=jnp.float32)

    @pl.when(ci == pl.num_programs(1) - 1)
    def _():
        out = (x_ref[0].astype(jnp.float32) + acc_scr[...]
               + bfc2_ref[0].astype(jnp.float32))
        out_ref[0] = out.astype(out_ref.dtype)


# ----------------------------------- wrappers --------------------------------------

def _full_spec(shape):
    # Whole-array block whose index never changes across the grid.
    return pl.BlockSpec(shape, lambda *args: (0,) * len(shape))


@functools.lru_cache(maxsize=None)
def _vmem_limit_bytes():
    # ~3/4 of physical VMEM: ~48 MiB on v7x (64 MiB), ~96 MiB on v5e/v6e (128 MiB).
    try:
        cap = getattr(pltpu.get_tpu_info(), "vmem_capacity_bytes", None)
    except Exception:
        cap = None
    if not cap:
        cap = 64 * 1024 * 1024
    return int(cap) * 3 // 4


def _pick_seq_tile(S):
    # Attention q-tile; the sequence is padded to a multiple of it.
    if S >= 128:
        return 128
    return _round_up(S, 8)


def _pick_i_chunk(I):
    # Intermediate-dim chunk: multiple of 128, capped at 1024, minimizing padding.
    if I <= 1024:
        return _round_up(I, 128)
    return max(range(128, 1025, 128), key=lambda c: (-(_round_up(I, c) - I), c))


def siglip_vision_layer(x, p, *, num_heads, eps, seq_len, seq_tile, i_chunk):
    """One SiglipVisionLayer forward on a (B, S_pad, D) padded residual stream."""
    B, s_pad, D = x.shape
    i_pad = p["wfc1"].shape[1]
    assert D % num_heads == 0
    hd = D // num_heads
    ts, ic = seq_tile, i_chunk
    assert s_pad % ts == 0 and i_pad % ic == 0
    n_st, n_ic = s_pad // ts, i_pad // ic

    vmem_bytes = _vmem_limit_bytes()
    cparams2 = pltpu.CompilerParams(
        dimension_semantics=("parallel", "parallel"), vmem_limit_bytes=vmem_bytes)
    cparams3 = pltpu.CompilerParams(
        dimension_semantics=("parallel", "arbitrary"), vmem_limit_bytes=vmem_bytes)

    # ---- A) LN1 + fused K/V projection (lane-dense bf16 output) ----
    kv = pl.pallas_call(
        functools.partial(kv_proj_kernel, eps=eps),
        out_shape=jax.ShapeDtypeStruct((B, s_pad, 2 * D), jnp.bfloat16),
        grid=(B, n_st),
        in_specs=[
            pl.BlockSpec((1, ts, D), lambda b, s: (b, s, 0)),   # hidden_states tile
            _full_spec((1, D)), _full_spec((1, D)),             # ln1 w/b
            _full_spec((D, 2 * D)), _full_spec((1, 2 * D)),     # fused K/V proj
        ],
        out_specs=pl.BlockSpec((1, ts, 2 * D), lambda b, s: (b, s, 0)),
        compiler_params=cparams2,
    )(x, p["ln1_w"], p["ln1_b"], p["wkv"], p["bkv"])

    # ---- B) LN1 + Q proj + batched attention + out-projection + residual ----
    x_attn = pl.pallas_call(
        functools.partial(attention_kernel, num_heads=num_heads, head_dim=hd,
                          seq_len=seq_len, eps=eps),
        out_shape=jax.ShapeDtypeStruct((B, s_pad, D), x.dtype),
        grid=(B, n_st),
        in_specs=[
            pl.BlockSpec((1, ts, D), lambda b, s: (b, s, 0)),         # residual tile
            _full_spec((1, D)), _full_spec((1, D)),                   # ln1 w/b
            _full_spec((D, D)), _full_spec((1, D)),                   # q proj (pre-scaled)
            pl.BlockSpec((1, s_pad, 2 * D), lambda b, s: (b, 0, 0)),  # full-seq KV
            _full_spec((D, D)), _full_spec((1, D)),                   # out proj
        ],
        out_specs=pl.BlockSpec((1, ts, D), lambda b, s: (b, s, 0)),
        compiler_params=cparams2,
    )(x, p["ln1_w"], p["ln1_b"], p["wq"], p["bq"], kv, p["wo"], p["bo"])

    # ---- C) LN2 + MLP: full sequence per step, so fc weight chunks stream only
    #         once per batch element (not once per sequence tile). ----
    out = pl.pallas_call(
        functools.partial(mlp_kernel, eps=eps),
        out_shape=jax.ShapeDtypeStruct((B, s_pad, D), x.dtype),
        grid=(B, n_ic),
        in_specs=[
            pl.BlockSpec((1, s_pad, D), lambda b, c: (b, 0, 0)),   # residual stream
            _full_spec((1, D)), _full_spec((1, D)),                # ln2 w/b
            pl.BlockSpec((D, ic), lambda b, c: (0, c)),            # fc1 weight chunk
            pl.BlockSpec((1, ic), lambda b, c: (0, c)),            # fc1 bias chunk
            pl.BlockSpec((ic, D), lambda b, c: (c, 0)),            # fc2 weight chunk
            _full_spec((1, D)),                                    # fc2 bias
        ],
        out_specs=pl.BlockSpec((1, s_pad, D), lambda b, c: (b, 0, 0)),
        scratch_shapes=[pltpu.VMEM((s_pad, D), jnp.bfloat16),      # LN2 output (reused)
                        pltpu.VMEM((s_pad, D), jnp.float32)],      # MLP accumulator
        compiler_params=cparams3,
    )(x_attn, p["ln2_w"], p["ln2_b"],
      p["wfc1"], p["bfc1"], p["wfc2"], p["bfc2"])
    return out


def prepare_layer_params(p, *, i_pad, q_scale):
    """Cast matmul weights to bf16, fuse K/V, fold the attention scale into Q, and
    zero-pad the intermediate dim (exact: gelu(0)=0 and padded fc2 rows are zero)."""
    I = p["wfc1"].shape[1]
    pad = i_pad - I
    wfc1, bfc1, wfc2 = p["wfc1"], p["bfc1"], p["wfc2"]
    if pad:
        wfc1 = jnp.pad(wfc1, ((0, 0), (0, pad)))
        bfc1 = jnp.pad(bfc1, ((0, 0), (0, pad)))
        wfc2 = jnp.pad(wfc2, ((0, pad), (0, 0)))
    return {
        "ln1_w": p["ln1_w"], "ln1_b": p["ln1_b"],
        "wq": (p["wq"] * q_scale).astype(jnp.bfloat16), "bq": p["bq"] * q_scale,
        "wkv": jnp.concatenate([p["wk"], p["wv"]], axis=1).astype(jnp.bfloat16),
        "bkv": jnp.concatenate([p["bk"], p["bv"]], axis=1),
        "wo": p["wo"].astype(jnp.bfloat16), "bo": p["bo"],
        "ln2_w": p["ln2_w"], "ln2_b": p["ln2_b"],
        "wfc1": wfc1.astype(jnp.bfloat16), "bfc1": bfc1,
        "wfc2": wfc2.astype(jnp.bfloat16), "bfc2": p["bfc2"],
    }


def siglip_encoder(x, layer_params, *, num_heads, eps, seq_tile=None, i_chunk=None):
    # SiglipEncoder.forward: sequentially apply each SiglipVisionLayer.
    B, S, D = x.shape
    I = layer_params[0]["wfc1"].shape[1]
    hd = D // num_heads

    ts = seq_tile if seq_tile is not None else _pick_seq_tile(S)
    ts = min(_round_up(ts, 8), _round_up(S, 8))
    ic = i_chunk if i_chunk is not None else _pick_i_chunk(I)
    ic = _round_up(ic, 128)
    s_pad = _round_up(S, ts)
    i_pad = _round_up(I, ic)

    # Cast / fuse / pad weights once, outside the layer loop.
    prepped = [prepare_layer_params(p, i_pad=i_pad, q_scale=hd ** -0.5)
               for p in layer_params]

    # Pad the sequence once; padded keys are masked inside the attention kernel.
    xp = jnp.pad(x, ((0, 0), (0, s_pad - S), (0, 0))) if s_pad != S else x
    for p in prepped:
        xp = siglip_vision_layer(xp, p, num_heads=num_heads, eps=eps,
                                 seq_len=S, seq_tile=ts, i_chunk=ic)
    return xp[:, :S, :] if s_pad != S else xp


# ----------------------------- params & pure-JAX reference -------------------------

def init_layer_params(key, D, I):
    ks = jax.random.split(key, 12)
    n = lambda k, shape: (0.02 * jax.random.normal(k, shape, jnp.float32))
    return {
        "ln1_w": jnp.ones((1, D), jnp.float32), "ln1_b": jnp.zeros((1, D), jnp.float32),
        "wq": n(ks[0], (D, D)), "bq": n(ks[1], (1, D)),
        "wk": n(ks[2], (D, D)), "bk": n(ks[3], (1, D)),
        "wv": n(ks[4], (D, D)), "bv": n(ks[5], (1, D)),
        "wo": n(ks[6], (D, D)), "bo": n(ks[7], (1, D)),
        "ln2_w": jnp.ones((1, D), jnp.float32), "ln2_b": jnp.zeros((1, D), jnp.float32),
        "wfc1": n(ks[8], (D, I)), "bfc1": n(ks[9], (1, I)),
        "wfc2": n(ks[10], (I, D)), "bfc2": n(ks[11], (1, D)),
    }


def reference_encoder(x, layer_params, *, num_heads, eps):
    HIGH = jax.lax.Precision.HIGHEST
    dot = lambda a, b: jnp.dot(a, b, precision=HIGH)
    B, S, D = x.shape
    hd = D // num_heads
    for p in layer_params:
        h = _layer_norm(x, p["ln1_w"][0], p["ln1_b"][0], eps)
        q = dot(h, p["wq"]) + p["bq"][0]
        k = dot(h, p["wk"]) + p["bk"][0]
        v = dot(h, p["wv"]) + p["bv"][0]
        q = q.reshape(B, S, num_heads, hd).transpose(0, 2, 1, 3)
        k = k.reshape(B, S, num_heads, hd).transpose(0, 2, 1, 3)
        v = v.reshape(B, S, num_heads, hd).transpose(0, 2, 1, 3)
        scores = jnp.einsum("bhqd,bhkd->bhqk", q, k, precision=HIGH) * (hd ** -0.5)
        probs = jax.nn.softmax(scores, axis=-1)
        attn = jnp.einsum("bhqk,bhkd->bhqd", probs, v, precision=HIGH)
        attn = attn.transpose(0, 2, 1, 3).reshape(B, S, D)
        attn = dot(attn, p["wo"]) + p["bo"][0]
        x = x + attn
        h2 = _layer_norm(x, p["ln2_w"][0], p["ln2_b"][0], eps)
        f = _gelu_tanh(dot(h2, p["wfc1"]) + p["bfc1"][0])
        x = x + dot(f, p["wfc2"]) + p["bfc2"][0]
    return x


# -------------------------------------- main ----------------------------------------

if __name__ == "__main__":
    # Small config consistent with SiglipVisionConfig semantics.  S and I are
    # deliberately NOT tile multiples so the pad + softmax-mask paths are exercised.
    hidden_size = 32
    intermediate_size = 200
    num_hidden_layers = 2
    num_attention_heads = 4
    layer_norm_eps = 1e-6
    B, S = 2, 14  # batch, num image tokens

    key = jax.random.PRNGKey(0)
    key, xkey = jax.random.split(key)
    x = jax.random.normal(xkey, (B, S, hidden_size), dtype=jnp.float32)

    layer_keys = jax.random.split(key, num_hidden_layers)
    layer_params = [init_layer_params(k, hidden_size, intermediate_size)
                    for k in layer_keys]

    # seq_tile=8 / i_chunk=128 exercise multi-tile, padding and masking at toy size.
    out = siglip_encoder(x, layer_params, num_heads=num_attention_heads,
                         eps=layer_norm_eps, seq_tile=8, i_chunk=128)
    out = jax.block_until_ready(out)

    ref = reference_encoder(x, layer_params, num_heads=num_attention_heads,
                            eps=layer_norm_eps)
    assert out.shape == (B, S, hidden_size)
    err = jnp.max(jnp.abs(out - ref))
    # bf16 matmul operands with f32 accumulation vs f32 reference.
    assert jnp.allclose(out, ref, atol=1e-2, rtol=1e-2), f"max abs err {err}"

    print("KERNEL_OK")
</pallas_src>

<mosaic_0001>
module attributes {stable_mosaic.version = 11 : i64} {
  func.func @kv_proj_kernel(%arg0: i32, %arg1: i32, %arg2: memref<1x8x32xf32, #tpu.memory_space<vmem>>, %arg3: memref<1x32xf32, #tpu.memory_space<vmem>>, %arg4: memref<1x32xf32, #tpu.memory_space<vmem>>, %arg5: memref<32x64xbf16, #tpu.memory_space<vmem>>, %arg6: memref<1x64xf32, #tpu.memory_space<vmem>>, %arg7: memref<1x8x64xbf16, #tpu.memory_space<vmem>>) attributes {dimension_semantics = [#tpu.dimension_semantics<parallel>, #tpu.dimension_semantics<parallel>], iteration_bounds = array<i64: 2, 2>, scalar_prefetch = 0 : i64, scratch_operands = 0 : i64, tpu.core_type = #tpu.core_type<tc>, window_params = [{transform_indices = @transform_0, window_bounds = array<i64: 1, 8, 32>}, {pipeline_mode = #tpu.pipeline_mode<synchronous>, transform_indices = @transform_1, window_bounds = array<i64: 1, 32>}, {pipeline_mode = #tpu.pipeline_mode<synchronous>, transform_indices = @transform_2, window_bounds = array<i64: 1, 32>}, {pipeline_mode = #tpu.pipeline_mode<synchronous>, transform_indices = @transform_3, window_bounds = array<i64: 32, 64>}, {pipeline_mode = #tpu.pipeline_mode<synchronous>, transform_indices = @transform_4, window_bounds = array<i64: 1, 64>}, {transform_indices = @transform_5, window_bounds = array<i64: 1, 8, 64>}]} {
    %c0 = arith.constant 0 : index
    %c0_0 = arith.constant 0 : index
    %c0_1 = arith.constant 0 : index
    %0 = vector.load %arg2[%c0, %c0_0, %c0_1] : memref<1x8x32xf32, #tpu.memory_space<vmem>>, vector<1x8x32xf32>
    %1 = vector.shape_cast %0 : vector<1x8x32xf32> to vector<8x32xf32>
    %c0_2 = arith.constant 0 : index
    %c0_3 = arith.constant 0 : index
    %2 = vector.load %arg3[%c0_2, %c0_3] : memref<1x32xf32, #tpu.memory_space<vmem>>, vector<1x32xf32>
    %3 = vector.shape_cast %2 : vector<1x32xf32> to vector<32xf32>
    %c0_4 = arith.constant 0 : index
    %c0_5 = arith.constant 0 : index
    %4 = vector.load %arg4[%c0_4, %c0_5] : memref<1x32xf32, #tpu.memory_space<vmem>>, vector<1x32xf32>
    %5 = vector.shape_cast %4 : vector<1x32xf32> to vector<32xf32>
    %cst = arith.constant dense<0.000000e+00> : vector<8xf32>
    %6 = vector.multi_reduction <add>, %1, %cst [1] : vector<8x32xf32> to vector<8xf32>
    %7 = vector.shape_cast %6 : vector<8xf32> to vector<8x1xf32>
    %cst_6 = arith.constant 3.200000e+01 : f32
    %8 = vector.broadcast %cst_6 : f32 to vector<8x1xf32>
    %9 = arith.divf %7, %8 : vector<8x1xf32>
    %10 = vector.broadcast %9 : vector<8x1xf32> to vector<8x32xf32>
    %11 = arith.subf %1, %10 : vector<8x32xf32>
    %12 = arith.mulf %11, %11 : vector<8x32xf32>
    %cst_7 = arith.constant dense<0.000000e+00> : vector<8xf32>
    %13 = vector.multi_reduction <add>, %12, %cst_7 [1] : vector<8x32xf32> to vector<8xf32>
    %14 = vector.shape_cast %13 : vector<8xf32> to vector<8x1xf32>
    %cst_8 = arith.constant 3.200000e+01 : f32
    %15 = vector.broadcast %cst_8 : f32 to vector<8x1xf32>
    %16 = arith.divf %14, %15 : vector<8x1xf32>
    %17 = vector.broadcast %9 : vector<8x1xf32> to vector<8x32xf32>
    %18 = arith.subf %1, %17 : vector<8x32xf32>
    %cst_9 = arith.constant 9.99999997E-7 : f32
    %19 = vector.broadcast %cst_9 : f32 to vector<8x1xf32>
    %20 = arith.addf %16, %19 : vector<8x1xf32>
    %21 = math.rsqrt %20 : vector<8x1xf32>
    %22 = vector.broadcast %21 : vector<8x1xf32> to vector<8x32xf32>
    %23 = arith.mulf %18, %22 : vector<8x32xf32>
    %24 = vector.shape_cast %3 : vector<32xf32> to vector<1x32xf32>
    %25 = vector.broadcast %24 : vector<1x32xf32> to vector<8x32xf32>
    %26 = arith.mulf %23, %25 : vector<8x32xf32>
    %27 = vector.shape_cast %5 : vector<32xf32> to vector<1x32xf32>
    %28 = vector.broadcast %27 : vector<1x32xf32> to vector<8x32xf32>
    %29 = arith.addf %26, %28 : vector<8x32xf32>
    %30 = arith.truncf %29 : vector<8x32xf32> to vector<8x32xbf16>
    %c0_10 = arith.constant 0 : index
    %c0_11 = arith.constant 0 : index
    %31 = vector.load %arg5[%c0_10, %c0_11] : memref<32x64xbf16, #tpu.memory_space<vmem>>, vector<32x64xbf16>
    %cst_12 = arith.constant dense<0.000000e+00> : vector<8x64xf32>
    %32 = tpu.matmul %30, %31, %cst_12 {dimension_numbers = #tpu.dot_dimension_numbers<[1], [0], [0], [1], [0, 0, 1, 1], [], []>} : vector<8x32xbf16>, vector<32x64xbf16>, vector<8x64xf32> -> vector<8x64xf32>
    %c0_13 = arith.constant 0 : index
    %c0_14 = arith.constant 0 : index
    %33 = vector.load %arg6[%c0_13, %c0_14] : memref<1x64xf32, #tpu.memory_space<vmem>>, vector<1x64xf32>
    %34 = vector.shape_cast %33 : vector<1x64xf32> to vector<64xf32>
    %35 = vector.shape_cast %34 : vector<64xf32> to vector<1x64xf32>
    %36 = vector.broadcast %35 : vector<1x64xf32> to vector<8x64xf32>
    %37 = arith.addf %32, %36 : vector<8x64xf32>
    %38 = arith.truncf %37 : vector<8x64xf32> to vector<8x64xbf16>
    %c0_15 = arith.constant 0 : index
    %c0_16 = arith.constant 0 : index
    %c0_17 = arith.constant 0 : index
    %39 = vector.load %arg7[%c0_15, %c0_16, %c0_17] : memref<1x8x64xbf16, #tpu.memory_space<vmem>>, vector<1x8x64xbf16>
    %40 = vector.shape_cast %39 : vector<1x8x64xbf16> to vector<8x64xbf16>
    %41 = vector.shape_cast %38 : vector<8x64xbf16> to vector<1x8x64xbf16>
    tpu.vector_store %arg7[%c0_15, %c0_16, %c0_17], %41 {strides = array<i32>} : memref<1x8x64xbf16, #tpu.memory_space<vmem>>, vector<1x8x64xbf16>,
    return
  }
  func.func @transform_0(%arg0: i32, %arg1: i32) -> (i32, i32, i32) {
    %c0_i32 = arith.constant 0 : i32
    %c0_i32_0 = arith.constant 0 : i32
    return %arg0, %arg1, %c0_i32 : i32, i32, i32
  }
  func.func @transform_1(%arg0: i32, %arg1: i32) -> (i32, i32) {
    %c0_i32 = arith.constant 0 : i32
    %c0_i32_0 = arith.constant 0 : i32
    %c0_i32_1 = arith.constant 0 : i32
    return %c0_i32, %c0_i32_0 : i32, i32
  }
  func.func @transform_2(%arg0: i32, %arg1: i32) -> (i32, i32) {
    %c0_i32 = arith.constant 0 : i32
    %c0_i32_0 = arith.constant 0 : i32
    %c0_i32_1 = arith.constant 0 : i32
    return %c0_i32, %c0_i32_0 : i32, i32
  }
  func.func @transform_3(%arg0: i32, %arg1: i32) -> (i32, i32) {
    %c0_i32 = arith.constant 0 : i32
    %c0_i32_0 = arith.constant 0 : i32
    %c0_i32_1 = arith.constant 0 : i32
    return %c0_i32, %c0_i32_0 : i32, i32
  }
  func.func @transform_4(%arg0: i32, %arg1: i32) -> (i32, i32) {
    %c0_i32 = arith.constant 0 : i32
    %c0_i32_0 = arith.constant 0 : i32
    %c0_i32_1 = arith.constant 0 : i32
    return %c0_i32, %c0_i32_0 : i32, i32
  }
  func.func @transform_5(%arg0: i32, %arg1: i32) -> (i32, i32, i32) {
    %c0_i32 = arith.constant 0 : i32
    %c0_i32_0 = arith.constant 0 : i32
    return %arg0, %arg1, %c0_i32 : i32, i32, i32
  }
}

</mosaic_0001>

<bundles_post_ra>
// kernel: tpu_custom_call.1
= control target key start
LH: loop header
LB: loop body
LE: loop exit
PB: predicated region body
PF: predicated region fallthrough
CT: control target
= control target key end

     0   :  { %s1068_s0 = inlined_call_operand.hbm [shape: f32[2,16,32], index: 0, kind: input, shape index: {}]   ;;  %s1069_s1 = inlined_call_operand.vmem [shape: f32[1,32], index: 1, kind: input, shape index: {}]   ;;  %s1070_s2 = inlined_call_operand.vmem [shape: f32[1,32], index: 2, kind: input, shape index: {}]   ;;  %s1071_s3 = inlined_call_operand.hbm [shape: bf16[32,64], index: 3, kind: input, shape index: {}]   ;;  %s1072_s4 = inlined_call_operand.vmem [shape: f32[1,64], index: 4, kind: input, shape index: {}]   ;;  %s1073_s5 = inlined_call_operand.hbm [shape: bf16[2,16,64], index: 5, kind: output, shape index: {}]  }
   0x1   :  { %1084 = sst [smem:[#allocation15_spill]] %s1071_s3 }
   0x2   :  { %1085 = sst [smem:[#allocation16_spill]] %s1073_s5 }
   0x3   :  { %10 = vsyncpa [#allocation3], 0 }
   0x4   :  { %12 = vsyncpa [#allocation3 + $0x1], 0 }
   0x5   :  { %13 = vsyncpa [#allocation6], 0 }
   0x6   :  { %14 = vsyncpa [#allocation4], 0 }
   0x7   :  { %16 = vsyncpa [#allocation4 + $0x1], 0  ;;  %s817_s18 = smov 0   ;;  %s819_s19 = smov 0  }
   0x8   :  { %s821_s20 = smov 0   ;;  %s823_s21 = smov 0  }
   0x9   :  { %s825_s22 = smov 0   ;;  %s827_s23 = smov 0  }
   0xa   :  { %s829_s24 = smov 0   ;;  %s831_s25 = smov 0  }
   0xb LB: > { %1086 = sst [smem:[#allocation11_spill]] %s750_s18  ;;  %s487_s26 = sadd.s32 4294967295, %s778_s25   ;;  %s778_s25 = sphi %s831_s25, %s22_s25   ;;  %s774_s24 = sphi %s829_s24, %s1117_s24   ;;  %s770_s23 = sphi %s827_s23, %s1116_s23   ;;  %s766_s22 = sphi %s825_s22, %s1115_s22   ;;  %s762_s21 = sphi %s823_s21, %s1114_s21   ;;  %s758_s20 = sphi %s821_s20, %s1113_s20   ;;  %s754_s19 = sphi %s819_s19, %s1112_s19   ;;  %s750_s18 = sphi %s817_s18, %s1111_s18  }
   0xc   : > { %s488_s27 = sadd.s32 4294967294, %s778_s25   ;;  %p56_p0 = scmp.ne.s32.totalorder %s754_s19, %s750_s18 }
   0xd   : > { %p861_p1 = scmp.eq.s32.totalorder %s487_s26, 0  ;;  %p865_p2 = scmp.eq.s32.totalorder %s487_s26, 3 }
   0xe   : > { %p172_p3 = scmp.eq.s32.totalorder %s488_s27, 3  ;;  %p489_p5 = scmp.ge.s32.totalorder %s778_s25, 1 }
   0xf   : > { %s1087_s28 = scalar_select %p861_p1, 1, 0 }
  0x10   : > { %s1088_s29 = scalar_select %p865_p2, 1, 0 }
  0x11   : > { %p871_p4 = por %p861_p1, %p56_p0  ;;  %p876_p6 = por %p172_p3, %p56_p0 }
  0x12   : > { %p179_p7 = scmp.lt.s32.totalorder %s778_s25, 5  ;;  %s780_s8 = smov [#allocation5]  }
  0x13   : > { %s1089_s30 = scalar_select %p871_p4, 1, 0 }
  0x14   : > { %s1090_s6 = scalar_select %p876_p6, 1, 0 }
  0x15   : > { %p881_p8 = pnand %p489_p5, %p179_p7  ;;  %s197_s9 = sshll.u32 %s780_s8, 4  ;;  %s198_s9 = int_to_ptr.vmem [resolvable:$true] %s197_s9 }
  0x16   : > { %1091 = sst [smem:[#allocation12_spill]] %s1090_s6  ;;  %s1094_s3 = sld [smem:[#allocation15_spill]] }
  0x17   : > { %s1092_s7 = scalar_select %p881_p8, 1, 0 }
  0x18   : > { %p529_p9 = pneg %p881_p8 }
  0x1a   : > { %p889_p10 = pnand %p529_p9, %p861_p1 }
  0x1c   : > { %s618_s13 = scalar_lea.hbm %s1094_s3, 256  ;;  %p620_p12 = pneg %p889_p10 }
  0x1d   : > { %p619_p11 = scmp.ne.s32.totalorder %s1094_s3, %s618_s13  ;;  %p625_p3 = scmp.lt.u32.totalorder %s618_s13, %s1094_s3 }
  0x1f   : > { %p621_p13 = pnand %p620_p12, %p619_p11 }
  0x21   : > { %p622_p0 = pneg %p621_p13 }
  0x23   : > { %p627_p5 = pnand %p625_p3, %p622_p0 }
  0x25   : > { %630 = shalt.err (!%p627_p5)
}
  0x26   : > { %s631_s26 = scalar_lea.vmem %s198_s9, 256  ;;  %p639_p1 = scmp.lt.s32.totalorder %s198_s9, %s198_s9 }
  0x27   : > { %p632_p7 = scmp.ne.s32.totalorder %s198_s9, %s631_s26  ;;  %p640_p4 = scmp.lt.s32.totalorder %s631_s26, %s631_s26 }
  0x29   : > { %p634_p9 = pnand %p632_p7, %p620_p12  ;;  %p641_p8 = por %p640_p4, %p639_p1 }
  0x2b   : > { %p635_p6 = pneg %p634_p9 }
  0x2d   : > { %p642_p2 = pnand %p641_p8, %p635_p6 }
  0x2f   : > { %645 = shalt.err (!%p642_p2)
}
  0x30   : > { %s781_s27 = smov 64   ;;  %s782_s8 = smov 4  }
  0x31   : > { %532 = dma.hbm_to_vmem [thread:$0]  (!%p889_p10), %s1094_s3, 256, %s198_s9, [#allocation6], %s781_s27, %s781_s27, %s782_s8  }
  0x32   : > { %s31_s13 = sadd.s32 1, %s770_s23  ;;  %s34_s14 = sadd.s32 1, %s774_s24 }
  0x33   : > { %p32_p1 = scmp.ge.s32.totalorder %s31_s13, 2  ;;  %s43_s15 = sadd.s32 1, %s758_s20 }
  0x34   : > { %p50_p2 = scmp.ne.s32.totalorder %s758_s20, %s754_s19  ;;  %p51_p4 = scmp.eq.s32.totalorder %s778_s25, 0 }
  0x35   : > { %s1119_s13 = smov (%p32_p1, %s31_s13), 0  ;;  %s1121_s14 = smov (!%p32_p1, %s34_s14), %s774_s24 }
  0x36   : > { %1095 = sst [smem:[#allocation13_spill]] %s1119_s13  ;;  %s39_s16 = ssub.s32 %s770_s23, %s1119_s13 }
  0x37   : > { %p36_p6 = scmp.ge.s32.totalorder %s1121_s14, 2  ;;  %p1096_p8 = scmp.ne.s32.totalorder %s1088_s29, 0 }
  0x38   : > { %p926_p10 = por %p51_p4, %p50_p2  ;;  %p542_p12 = scmp.lt.s32.totalorder %s778_s25, 4 }
  0x39   : > { %p922_p11 = por %p1096_p8, %p50_p2  ;;  %s1123_s14 = smov (%p36_p6, %s1121_s14), 0 }
  0x3a   : > { %s214_s17 = sand.u32 1, %s758_s20   ;;  %s493_s26 = sshll.u32 %s774_s24, 1 }
  0x3b   : > { %s1097_s10 = scalar_select %p922_p11, 1, 0 }
  0x3c   : > { %s38_s27 = ssub.s32 %s774_s24, %s1123_s14  ;;  %s492_s11 = sshll.u32 %s214_s17, 3 }
  0x3d   : > { %1098 = sst [smem:[#allocation14_spill]] %s1097_s10  ;;  %s40_s8 = sor.u32 %s39_s16, %s38_s27 }
  0x3e   : > { %p41_p13 = scmp.eq.s32.totalorder %s40_s8, 0  ;;  %s223_s29 = sadd.s32 %s770_s23, %s493_s26 }
  0x3f   : > { %s218_s12 = scalar_lea.vmem [#allocation2], %s492_s11  ;;  %s494_s6 = sshll.u32 %s223_s29, 7 }
  0x40   : > { %s227_s3 = sshll.u32 %s218_s12, 4  ;;  %s946_s10 = scalar_lea.hbm %s1068_s0, %s494_s6  ;;  %s941_s3 = int_to_ptr.vmem [resolvable:$true] %s227_s3 }
  0x41   : > { %s939_s13 = scalar_select %p41_p13, %s758_s20, %s43_s15  }
  0x42   : > { %p952_p0 = pnand %p542_p12, %p926_p10  ;;  %s215_s15 = scalar_lea.sflag [#allocation3], %s214_s17 }
  0x43   : > { %s646_s26 = scalar_lea.hbm %s946_s10, 128  ;;  %s651_s6 = scalar_lea.hbm %s1068_s0, 512 }
  0x44   : > { %p647_p3 = scmp.ne.s32.totalorder %s946_s10, %s646_s26  ;;  %p648_p5 = pneg %p952_p0 }
  0x45   : > { %p652_p1 = scmp.lt.u32.totalorder %s946_s10, %s1068_s0  ;;  %p653_p2 = scmp.lt.u32.totalorder %s651_s6, %s646_s26 }
  0x46   : > { %p649_p7 = pnand %p648_p5, %p647_p3  ;;  %p655_p6 = scmp.lt.u32.totalorder %s646_s26, %s946_s10 }
  0x47   : > { %p654_p4 = por %p653_p2, %p652_p1 }
  0x48   : > { %p650_p9 = pneg %p649_p7 }
  0x49   : > { %p656_p8 = por %p655_p6, %p654_p4 }
  0x4b   : > { %p657_p10 = pnand %p656_p8, %p650_p9 }
  0x4d   : > { %660 = shalt.err (!%p657_p10)
}
  0x4e   : > { %s661_s17 = scalar_lea.vmem %s941_s3, 128  ;;  %s783_s8 = smov [#allocation2]  }
  0x4f   : > { %p662_p12 = scmp.ne.s32.totalorder %s941_s3, %s661_s17  ;;  %s666_s11 = sshll.u32 %s783_s8, 4  ;;  %s667_s11 = int_to_ptr.vmem [resolvable:$false] %s666_s11 }
  0x50   : > { %s668_s29 = scalar_lea.vmem %s667_s11, 256  ;;  %p669_p7 = scmp.lt.s32.totalorder %s941_s3, %s667_s11 }
  0x51   : > { %p664_p13 = pnand %p662_p12, %p648_p5  ;;  %p670_p1 = scmp.lt.s32.totalorder %s668_s29, %s661_s17 }
  0x53   : > { %p665_p3 = pneg %p664_p13  ;;  %p671_p2 = por %p670_p1, %p669_p7 }
  0x55   : > { %p672_p4 = pnand %p671_p2, %p665_p3 }
  0x57   : > { %675 = shalt.err (!%p672_p4)
}
  0x58   : > { %536 = dma.hbm_to_vmem [thread:$0]  (!%p952_p0), %s946_s10, 128, %s941_s3, %s215_s15  }
  0x59   : > { %p1101_p9 = scmp.ne.s32.totalorder %s1092_s7, 0 }
  0x5a   : > { %s984_s12 = sand.u32 (!%p1101_p9), 1, %s754_s19   ;;  %p1102_p5 = scmp.ne.s32.totalorder (!%p1101_p9), %s1089_s30, 0 }
  0x5b   : > { %236 = sbr.rel (%p1101_p9) target bundleno = 648 (0x288), region = 40  ;;  %s496_s26 = sshll.u32 (!%p1101_p9), %s984_s12, 3 }
  0x5c   : > { %s239_s5 = scalar_lea.sflag (!%p1101_p9), [#allocation3], %s984_s12  ;;  %s242_s18 = scalar_lea.vmem (!%p1101_p9), [#allocation2], %s496_s26 }
  0x62   : > { %737 = dma.done.wait (%p1102_p5), %s239_s5, 128  }
  0x63   : > { %739 = vsyncadd (%p1102_p5), %s239_s5, 4294967168  ;;  %p1103_p6 = scmp.ne.s32.totalorder %s1087_s28, 0 }
  0x65   : > { %741 = dma.done.wait (%p1103_p6), [#allocation6], 256  }
  0x66   : > { %743 = vsyncadd (%p1103_p6), [#allocation6], 4294967040  ;;  %vm277_vm0 = vcmask 261120   ;;  %v274_v0 = vld [vmem:[%s242_s18] sm:$0xff]  ;;  %v614_v7 = vld [vmem:[#allocation5] sm:$0xff]   ;;  %v784_v8 = vmov 0.0  }
  0x67   : > { %v278_v1 = vsel %vm277_vm0, %v274_v0, 0.0  ;;  %513 = vmatprep.subr.bf16.mxu0 %v784_v8  ;;  %v615_v9 = vld [vmem:[#allocation5 + $0x8] sm:$0xff]   ;;  %vm785_vm1 = vmmov 0   ;;  %v499_v14 = vld [vmem:[%s1069_s1] ss:$0 sm:$0xff]  ;;  %s498_s10 = sshll.u32 %s984_s12, 2 }
  0x68   : > { %279 = vadd.xlane.f32.xlu0 %v278_v1  ;;  %514 = vmatpush3.bf16.msra.mxu0 %v614_v7  ;;  %v500_v16 = vld [vmem:[%s1070_s2] ss:$0 sm:$0xff]  ;;  %s506_s16 = sshll.u32 %s766_s22, 1  ;;  %s272_s8 = scalar_lea.vmem [#allocation7], %s498_s10  ;;  %vm374_vm2 = vcmask 519168  }
  0x69   : > { %517 = vmatprep.mubr.msk.bf16.mxu0 %vm785_vm1, %v784_v8  ;;  %515 = vmatprep.subr.bf16.mxu0 %v784_v8  ;;  %s388_s15 = sadd.s32 %s762_s21, %s506_s16  ;;  %v501_v20 = vld [vmem:[%s1072_s4] ss:$0 sm:$0xff]  ;;  %s392_s11 = sshll.u32 %s272_s8, 4  ;;  %s1016_s11 = int_to_ptr.vmem [resolvable:$true] %s392_s11 }
  0x6a   : > { %s507_s17 = sshll.u32 %s388_s15, 6  ;;  %s1105_s22 = sld [smem:[#allocation16_spill]] }
  0x6b   : > { %s377_s21 = scalar_lea.sflag [#allocation4], %s984_s12  ;;  %s676_s3 = scalar_lea.vmem %s1016_s11, 64 }
  0x6c   : > { %516 = vmatpush3.bf16.msra.mxu0 %v615_v9  ;;  %p677_p0 = scmp.ne.s32.totalorder %s1016_s11, %s676_s3  ;;  %s786_s28 = smov [#allocation7]  }
  0x6d   : > { %s680_s30 = sshll.u32 %s786_s28, 4  ;;  %s681_s30 = int_to_ptr.vmem [resolvable:$false] %s680_s30 }
  0x6e   : > { %p678_p8 = pnand %p677_p0, %p922_p11  ;;  %s682_s7 = scalar_lea.vmem %s681_s30, 128 }
  0x6f   : > { %p683_p12 = scmp.lt.s32.totalorder %s1016_s11, %s681_s30  ;;  %p684_p13 = scmp.lt.s32.totalorder %s682_s7, %s676_s3 }
  0x70   : > { %s1106_s5 = smov %s1105_s22  ;;  %s1014_s18 = scalar_lea.hbm %s1105_s22, %s507_s17 }
  0x71   : > { %p679_p10 = pneg %p678_p8  ;;  %p685_p3 = por %p684_p13, %p683_p12 }
  0x73   : > { %p686_p7 = pnand %p685_p3, %p679_p10 }
  0xf5   : > { %v280_v2 = vpop.xlane.xlu0 %279 }
  0xf6   : > { %v282_v3 = vmul.f32 0.03125, %v280_v2 }
  0xf8   : > { %v283_v4 = vsub.f32 %v274_v0, %v282_v3 }
  0xfa   : > { %v284_v5 = vmul.f32 %v283_v4, %v283_v4 }
  0xfc   : > { %v285_v6 = vsel %vm277_vm0, %v284_v5, 0.0 }
  0xfd   : > { %286 = vadd.xlane.f32.xlu0 %v285_v6 }
 0x18a   : > { %v287_v10 = vpop.xlane.xlu0 %286 }
 0x18b   : > { %v288_v11 = vmul.f32 0.03125, %v287_v10 }
 0x18d   : > { %v289_v12 = vadd.f32 1e-06, %v288_v11 }
 0x18f   : > { %616 = vrsqrt.f32 %v289_v12 }
 0x199   : > { %v617_v13 = vpop.eup %616 }
 0x19a   : > { %v291_v15 = vmul.f32 %v617_v13, %v283_v4 }
 0x19c   : > { %v298_v17 = vmul.f32 %v499_v14, %v291_v15 }
 0x19e   : > { %v305_v18 = vadd.f32 %v500_v16, %v298_v17 }
 0x1a0   : > { %v306_v19 = vpack.c.bf16 %v305_v18, %v305_v18 }
 0x1a2   : > { %518 = vmatmul.mubr.msk.bf16.vlgmr.msra.gmra.mrb[0].mxu0 %vm277_vm0, %v306_v19 }
 0x275   : > { %v367_v21 = vpop.f32.mrb[0].mxu0 }
 0x276   : > { %v368_v22 = vadd.f32 %v501_v20, %v367_v21  ;;  %v519_v23 = vpop.f32.mrb[1].mxu0 }
 0x277   : > { %v370_v24 = vpop.f32.mrb[2].mxu0 }
 0x278   : > { %v373_v25 = vpack.c.bf16 %v368_v22, %v368_v22  ;;  %v520_v26 = vpop.f32.mrb[3].mxu0 }
 0x27a   : > { %375 = vst.msk [vmem:[%s272_s8] sm:$0xf] %vm374_vm2, %v373_v25 }
 0x27b   : > { %689 = shalt.err (!%p686_p7)
}
 0x27c   : > { %s690_s12 = scalar_lea.hbm %s1014_s18, 64  ;;  %s694_s15 = scalar_lea.hbm %s1106_s5, 256 }
 0x27d   : > { %p691_p1 = scmp.ne.s32.totalorder %s1014_s18, %s690_s12  ;;  %p695_p9 = scmp.lt.u32.totalorder %s1014_s18, %s1106_s5 }
 0x27e   : > { %p696_p5 = scmp.lt.u32.totalorder %s694_s15, %s690_s12  ;;  %p698_p0 = scmp.lt.u32.totalorder %s690_s12, %s1014_s18 }
 0x27f   : > { %p692_p2 = pnand %p691_p1, %p922_p11 }
 0x280   : > { %p697_p6 = por %p696_p5, %p695_p9 }
 0x281   : > { %p693_p4 = pneg %p692_p2 }
 0x282   : > { %p699_p8 = por %p698_p0, %p697_p6 }
 0x284   : > { %p700_p10 = pnand %p699_p8, %p693_p4 }
 0x286   : > { %703 = shalt.err (!%p700_p10)
}
 0x287   : > { %527 = dma.vmem_to_hbm [thread:$0]  (%p922_p11), %s1016_s11, 64, %s1014_s18, %s377_s21  }
 0x288 PF: > { %s1107_s17 = sld [smem:[#allocation11_spill]]  ;;  %s1108_s8 = sld [smem:[#allocation12_spill]] }
 0x289   : > { %p544_p12 = scmp.ge.s32.totalorder %s778_s25, 2 }
 0x28e   : > { %s404_s29 = sand.u32 1, %s1107_s17   ;;  %p1109_p13 = scmp.ne.s32.totalorder %s1108_s8, 0 }
 0x28f   : > { %s405_s26 = scalar_lea.sflag [#allocation4], %s404_s29 }
 0x290   : > { %p538_p3 = pnand %p544_p12, %p1109_p13 }
 0x292   : > { %745 = dma.done.wait (!%p538_p3), %s405_s26, 64  }
 0x293   : > { %747 = vsyncadd (!%p538_p3), %s405_s26, 4294967232  ;;  %s22_s25 = sadd.s32 1, %s778_s25   ;;  %s1110_s27 = sld [smem:[#allocation13_spill]] }
 0x294   : > { %p19_p7 = scmp.ge.s32.totalorder %s22_s25, 6   ;;  %s1111_s18 = smov %s754_s19 }
 0x295   : > { %s1112_s19 = smov %s758_s20  ;;  %s1113_s20 = smov %s939_s13 }
 0x296   : > { %s1114_s21 = smov %s770_s23  ;;  %s1115_s22 = smov %s774_s24 }
 0x297   : > { %s1117_s24 = smov %s1123_s14  ;;  %21 = sbr.rel (!%p19_p7) target bundleno = 11 (0xb), region = 89 }
 0x299   : > { %s1116_s23 = smov %s1110_s27 }
 0x29e   :  { %410 = vsyncpa [#allocation3], 1 }
 0x29f   :  { %412 = vsyncpa [#allocation3 + $0x1], 1 }
 0x2a0   :  { %413 = vsyncpa [#allocation6], 1 }
 0x2a1   :  { %414 = vsyncpa [#allocation4], 1 }
 0x2a2   :  { %416 = vsyncpa [#allocation4 + $0x1], 1 }

</bundles_post_ra>
